<compile_context>
chip_gen: v6e
topology: v6e:2x2x1
jax: 0.10.0
libtpu: 0.0.40
codegen_flags: <defaults>
</compile_context>

<pallas_src>
import functools

import jax
import jax.numpy as jnp
from jax.experimental import pallas as pl
from jax.experimental.pallas import tpu as pltpu


def _myquan_kernel(s_ref, x_ref, o_ref, *, neg_min, pos_max):
    # s_ref: (1,) f32 in SMEM; x_ref / o_ref: (block_rows, lanes) in VMEM.
    s = s_ref[0]
    x = x_ref[...].astype(jnp.float32)
    # Exact divide (not reciprocal-multiply): the kernel is HBM-bound with
    # large VPU/EUP slack, so this costs nothing and matches torch's `x / s`.
    q = jnp.floor(x / s + 0.5)
    q = jnp.clip(q, neg_min, pos_max)
    o_ref[...] = (q * s).astype(o_ref.dtype)


def _tpu_generation():
    """Return (per_buffer_target_bytes, num_tensorcores) for the local device."""
    try:
        kind = jax.devices()[0].device_kind.lower()
    except Exception:
        kind = ""
    if "v7" in kind:
        return 8 << 20, 2   # 3.2 TB/s HBM, 2 TCs/chip, 64 MiB physical VMEM/TC
    if "v6" in kind:
        return 4 << 20, 1   # 1.4 TB/s HBM, 32 MiB scoped VMEM default
    return 2 << 20, 1       # v5e / unknown: conservative (16 MiB scoped default)


def _round_up(v, m):
    return -(-v // m) * m


def _quantize_2d(x2d, s_arr, *, neg_min, pos_max, donate_x=False):
    rows, lanes = x2d.shape
    io_dtype = x2d.dtype
    itemsize = jnp.dtype(io_dtype).itemsize
    target_bytes, num_cores = _tpu_generation()

    # dtype-specific sublane multiple: 8 for 4-byte, 16 for 2-byte, 32 for 1-byte.
    sublane = 8 * max(1, 4 // itemsize)

    block_rows = max(sublane,
                     (target_bytes // (lanes * itemsize)) // sublane * sublane)
    if block_rows >= rows:
        block_rows = rows                       # full-dim block (always legal)
    if num_cores > 1 and rows >= 2 * sublane:
        # Keep at least num_cores grid steps so "parallel" can shard across TCs.
        per_core_rows = _round_up(pl.cdiv(rows, num_cores), sublane)
        if per_core_rows < rows:
            block_rows = min(block_rows, per_core_rows)
    num_blocks = pl.cdiv(rows, block_rows)      # ragged last block handled by Pallas

    block_bytes = block_rows * lanes * itemsize
    # 2 (in + out) x 2 (double-buffered) blocks + headroom; stay under the
    # smallest physical VMEM across generations (v7x: 64 MiB per TC).
    vmem_limit = int(min(4 * block_bytes + (4 << 20), 64 << 20))

    kernel = functools.partial(_myquan_kernel, neg_min=neg_min, pos_max=pos_max)
    return pl.pallas_call(
        kernel,
        out_shape=jax.ShapeDtypeStruct((rows, lanes), io_dtype),
        grid=(num_blocks,),
        in_specs=[
            pl.BlockSpec(memory_space=pltpu.MemorySpace.SMEM),     # s (scalar)
            pl.BlockSpec((block_rows, lanes), lambda i: (i, 0)),   # x block
        ],
        out_specs=pl.BlockSpec((block_rows, lanes), lambda i: (i, 0)),
        compiler_params=pltpu.CompilerParams(
            dimension_semantics=("parallel",),   # lets v7x shard across its 2 TCs
            vmem_limit_bytes=vmem_limit,
        ),
        cost_estimate=pl.CostEstimate(
            flops=4 * rows * lanes,
            transcendentals=0,
            bytes_accessed=2 * rows * lanes * itemsize,
        ),
        input_output_aliases=({1: 0} if donate_x else {}),
    )(s_arr, x2d)


def myquan_forward(x, s, *, level, sym=False, donate_x=False):
    """Pallas implementation of MyQuan.forward (inference value path).

    x: jnp.ndarray of any shape (e.g. NCHW), floating dtype.
    s: scalar (Python float or jnp scalar) learned step size.
    donate_x: pass True only if the caller donates x (reuses its HBM buffer).
    """
    if level >= 512:
        return x                                 # pos_max == 'full': identity

    if sym:
        pos_max = float(level // 2 - 1)
        # Intentionally (-level)//2 (floor division), matching the torch
        # expression `float(-level // 2)` exactly (e.g. level=15 -> -8).
        neg_min = float(-level // 2)
    else:
        pos_max = float(level - 1)
        neg_min = 0.0

    if not jnp.issubdtype(x.dtype, jnp.floating):
        raise TypeError(f"MyQuan expects floating-point activations, got {x.dtype}")

    orig_shape = x.shape
    io_dtype = x.dtype
    s_arr = jnp.asarray(s, dtype=jnp.float32).reshape((1,))

    xf = x.reshape(-1)
    n = xf.shape[0]

    # Widest lane width (multiple of 128) that divides n; any <lanes tail is
    # handled below with plain jnp (no full-tensor pad + slice pass).
    lanes = 128
    for cand in (1024, 512, 256, 128):
        if n % cand == 0:
            lanes = cand
            break
    n_main = (n // lanes) * lanes

    parts = []
    if n_main > 0:
        x_main = xf if n_main == n else xf[:n_main]
        out2d = _quantize_2d(
            x_main.reshape(n_main // lanes, lanes), s_arr,
            neg_min=neg_min, pos_max=pos_max, donate_x=donate_x)
        parts.append(out2d.reshape(-1))
    if n_main < n:
        tail = xf[n_main:].astype(jnp.float32)
        q = jnp.clip(jnp.floor(tail / s_arr[0] + 0.5), neg_min, pos_max) * s_arr[0]
        parts.append(q.astype(io_dtype))

    out = parts[0] if len(parts) == 1 else jnp.concatenate(parts)
    return out.reshape(orig_shape)


def myquan_reference(x, s, *, level, sym=False):
    """Pure-JAX reference for correctness checking."""
    if level >= 512:
        return x
    if sym:
        pos_max = float(level // 2 - 1)
        neg_min = float(-level // 2)
    else:
        pos_max = float(level - 1)
        neg_min = 0.0
    s32 = jnp.float32(s)
    xf = x.astype(jnp.float32)
    q = jnp.clip(jnp.floor(xf / s32 + 0.5), neg_min, pos_max) * s32
    return q.astype(x.dtype)


if __name__ == "__main__":
    key = jax.random.PRNGKey(0)
    # Small NCHW input consistent with a conv-activation quantizer.
    B, C, H, W = 2, 4, 16, 16
    x = jax.random.normal(key, (B, C, H, W), dtype=jnp.float32) * 3.0

    # TODO(synk): the training-time `init_state == 0` re-initialization of s
    # and the grad_scale/floor_pass STE are gradient/training-only and are not
    # part of this inference forward kernel.
    cases = [
        (1.0, 16, True),     # symmetric 4-bit style: clip to [-8, 7]
        (0.25, 4, False),    # asymmetric: clip to [0, 3]
        (0.3, 15, True),     # odd level + arbitrary s (exact-divide path)
    ]
    for s, level, sym in cases:
        out = jax.block_until_ready(myquan_forward(x, s, level=level, sym=sym))
        ref = myquan_reference(x, s, level=level, sym=sym)
        assert out.shape == x.shape and out.dtype == x.dtype
        assert jnp.allclose(out, ref, atol=1e-6, rtol=1e-6), (
            f"mismatch vs reference (s={s}, level={level}, sym={sym})")

    # 'full' (identity) branch.
    out_full = jax.block_until_ready(myquan_forward(x, 1.0, level=512, sym=True))
    assert jnp.array_equal(out_full, x)

    # bf16 path (no f32 upcast at the HBM boundary).
    x_bf16 = x.astype(jnp.bfloat16)
    out_bf = jax.block_until_ready(myquan_forward(x_bf16, 1.0, level=16, sym=True))
    ref_bf = myquan_reference(x_bf16, 1.0, level=16, sym=True)
    assert out_bf.dtype == jnp.bfloat16
    assert jnp.allclose(out_bf.astype(jnp.float32), ref_bf.astype(jnp.float32),
                        atol=1e-2, rtol=1e-2)

    # Ragged sizes: kernel prefix + plain-jnp tail (201 = 128 + 73), and an
    # all-tail case (< 128 elements) — no full-tensor pad/slice anywhere.
    for shape in [(3, 67), (5, 5, 5)]:
        xr = jax.random.normal(jax.random.PRNGKey(1), shape, dtype=jnp.float32) * 2.0
        out_r = jax.block_until_ready(myquan_forward(xr, 0.5, level=8, sym=True))
        ref_r = myquan_reference(xr, 0.5, level=8, sym=True)
        assert out_r.shape == xr.shape
        assert jnp.allclose(out_r, ref_r, atol=1e-6, rtol=1e-6), f"ragged mismatch {shape}"

    print("KERNEL_OK")
</pallas_src>

<mosaic_0001>
module attributes {stable_mosaic.version = 11 : i64} {
  func.func @_myquan_kernel(%arg0: i32, %arg1: memref<1xf32, #tpu.memory_space<smem>>, %arg2: memref<2x1024xf32, #tpu.memory_space<vmem>>, %arg3: memref<2x1024xf32, #tpu.memory_space<vmem>>) attributes {dimension_semantics = [#tpu.dimension_semantics<parallel>], iteration_bounds = array<i64: 1>, scalar_prefetch = 0 : i64, scratch_operands = 0 : i64, tpu.core_type = #tpu.core_type<tc>, window_params = [{transform_indices = @transform_0, window_bounds = array<i64: 1>}, {transform_indices = @transform_1, window_bounds = array<i64: 2, 1024>}, {transform_indices = @transform_2, window_bounds = array<i64: 2, 1024>}]} {
    %c0 = arith.constant 0 : index
    %0 = memref.load %arg1[%c0] : memref<1xf32, #tpu.memory_space<smem>>
    %c0_0 = arith.constant 0 : index
    %c0_1 = arith.constant 0 : index
    %1 = vector.load %arg2[%c0_0, %c0_1] : memref<2x1024xf32, #tpu.memory_space<vmem>>, vector<2x1024xf32>
    %2 = vector.broadcast %0 : f32 to vector<2x1024xf32>
    %3 = arith.divf %1, %2 : vector<2x1024xf32>
    %cst = arith.constant 5.000000e-01 : f32
    %4 = vector.broadcast %cst : f32 to vector<2x1024xf32>
    %5 = arith.addf %3, %4 : vector<2x1024xf32>
    %6 = math.floor %5 : vector<2x1024xf32>
    %cst_2 = arith.constant -8.000000e+00 : f32
    %cst_3 = arith.constant 7.000000e+00 : f32
    %7 = vector.broadcast %cst_2 : f32 to vector<2x1024xf32>
    %8 = arith.maximumf %7, %6 : vector<2x1024xf32>
    %9 = vector.broadcast %cst_3 : f32 to vector<2x1024xf32>
    %10 = arith.minimumf %9, %8 : vector<2x1024xf32>
    %11 = vector.broadcast %0 : f32 to vector<2x1024xf32>
    %12 = arith.mulf %10, %11 : vector<2x1024xf32>
    %c0_4 = arith.constant 0 : index
    %c0_5 = arith.constant 0 : index
    %13 = vector.load %arg3[%c0_4, %c0_5] : memref<2x1024xf32, #tpu.memory_space<vmem>>, vector<2x1024xf32>
    tpu.vector_store %arg3[%c0_4, %c0_5], %12 {strides = array<i32>} : memref<2x1024xf32, #tpu.memory_space<vmem>>, vector<2x1024xf32>,
    return
  }
  func.func @transform_0(%arg0: i32) -> i32 {
    %c0_i32 = arith.constant 0 : i32
    %c0_i32_0 = arith.constant 0 : i32
    return %c0_i32 : i32
  }
  func.func @transform_1(%arg0: i32) -> (i32, i32) {
    %c0_i32 = arith.constant 0 : i32
    %c0_i32_0 = arith.constant 0 : i32
    return %arg0, %c0_i32 : i32, i32
  }
  func.func @transform_2(%arg0: i32) -> (i32, i32) {
    %c0_i32 = arith.constant 0 : i32
    %c0_i32_0 = arith.constant 0 : i32
    return %arg0, %c0_i32 : i32, i32
  }
}

</mosaic_0001>

<bundles_post_ra>
// kernel: tpu_custom_call.1
= control target key start
LH: loop header
LB: loop body
LE: loop exit
PB: predicated region body
PF: predicated region fallthrough
CT: control target
= control target key end

     0   :  { %8 = vsyncpa [#allocation4], 0  ;;  %s133_s0 = inlined_call_operand.<no memory space> [shape: f32[1], index: 0, kind: input, shape index: {}]   ;;  %s134_s1 = inlined_call_operand.hbm [shape: f32[2,1024], index: 1, kind: input, shape index: {}]   ;;  %s135_s2 = inlined_call_operand.hbm [shape: f32[2,1024], index: 2, kind: output, shape index: {}]  }
   0x1   :  { %9 = vsyncpa [#allocation5], 0  ;;  %s107_s9 = smov [#allocation3]  }
   0x2   :  { %s18_s10 = sshll.u32 %s107_s9, 4  ;;  %s19_s10 = int_to_ptr.vmem [resolvable:$true] %s18_s10 }
   0x3   :  { %s71_s11 = scalar_lea.vmem %s19_s10, 256  ;;  %p76_p1 = scmp.lt.s32.totalorder %s19_s10, %s19_s10 }
   0x4   :  { %p72_p0 = scmp.ne.s32.totalorder %s19_s10, %s71_s11  ;;  %p77_p2 = scmp.lt.s32.totalorder %s71_s11, %s71_s11 }
   0x6   :  { %p78_p3 = por %p77_p2, %p76_p1 }
   0x8   :  { %p79_p4 = pnand %p78_p3, %p72_p0 }
   0xa   :  { %82 = shalt.err (!%p79_p4)
}
   0xb   :  { %21 = dma.hbm_to_vmem [thread:$0]  %s134_s1, 256, %s19_s10, [#allocation4]  }
   0xc   :  { %103 = dma.done.wait [#allocation4], 256  }
   0xd   :  { %104 = vsyncadd [#allocation4], 4294967040  ;;  %v28_v0 = vstv %s133_s0  ;;  %v26_v1 = vld [vmem:[#allocation3] sm:$0xff]  ;;  %v27_v2 = vld [vmem:[#allocation3 + $0x8] sm:$0xff]  ;;  %s108_s16 = smov [#allocation6]  }
   0xe   :  { %61 = vrcp.f32 %v28_v0  ;;  %s50_s1 = sshll.u32 %s108_s16, 4  ;;  %s51_s1 = int_to_ptr.vmem [resolvable:$true] %s50_s1 }
   0xf   :  { %s83_s0 = scalar_lea.vmem %s51_s1, 256  ;;  %p88_p6 = scmp.lt.s32.totalorder %s51_s1, %s51_s1 }
  0x10   :  { %p84_p5 = scmp.ne.s32.totalorder %s51_s1, %s83_s0  ;;  %p89_p7 = scmp.lt.s32.totalorder %s83_s0, %s83_s0 }
  0x12   :  { %p90_p8 = por %p89_p7, %p88_p6 }
  0x14   :  { %p91_p9 = pnand %p90_p8, %p84_p5 }
  0x1b   :  { %v62_v3 = vpop.eup %61 }
  0x1c   :  { %v30_v4 = vmul.f32 %v62_v3, %v26_v1  ;;  %v31_v5 = vmul.f32 %v62_v3, %v27_v2 }
  0x1e   :  { %v32_v6 = vadd.f32 0.5, %v30_v4  ;;  %v33_v7 = vadd.f32 0.5, %v31_v5 }
  0x20   :  { %v34_v8 = vfloor.f32 %v32_v6  ;;  %v35_v9 = vfloor.f32 %v33_v7 }
  0x22   :  { %v36_v10 = vmax.f32 %v34_v8, -8.0  ;;  %v37_v11 = vmax.f32 %v35_v9, -8.0 }
  0x24   :  { %v38_v12 = vmin.f32 %v36_v10, 7.0  ;;  %v39_v13 = vmin.f32 %v37_v11, 7.0 }
  0x26   :  { %v40_v14 = vmul.f32 %v38_v12, %v28_v0  ;;  %v41_v15 = vmul.f32 %v39_v13, %v28_v0 }
  0x28   :  { %42 = vst [vmem:[#allocation6] sm:$0xff] %v40_v14  ;;  %43 = vst [vmem:[#allocation6 + $0x8] sm:$0xff] %v41_v15 }
  0x29   :  { %94 = shalt.err (!%p91_p9)
}
  0x2a   :  { %53 = dma.vmem_to_hbm [thread:$0]  %s51_s1, 256, %s135_s2, [#allocation5]  }
  0x2b   :  { %105 = dma.done.wait [#allocation5], 256  }
  0x2c   :  { %106 = vsyncadd [#allocation5], 4294967040 }
  0x2d   :  { %57 = vsyncpa [#allocation4], 1 }
  0x2e   :  { %58 = vsyncpa [#allocation5], 1 }

</bundles_post_ra>
